<compile_context>
chip_gen: v5e
topology: v5e:2x2
jax: 0.10.0
libtpu: 0.0.40
codegen_flags: <defaults>
</compile_context>

<pallas_src>
import jax
import jax.numpy as jnp
from jax.experimental import pallas as pl
from jax.experimental.pallas import tpu as pltpu


KS = 3            # kernel size
EPS = 1e-5        # BatchNorm2d default eps
LANES = 128       # TPU lane width


def conv_stats_kernel(xm_ref, xh_ref, w_ref, conv_ref, stats_ref):
    """Pass 1: 3x3 conv (as one im2col matmul) + per-tile BN partial stats.

    xm_ref   : (1, TH, Wp, Cin)   main rows of the padded input tile
    xh_ref   : (1, 2,  Wp, Cin)   2-row bottom halo
    w_ref    : (9*Cin, Coutp)     conv weights, (kh,kw,ci)-major, Cout padded to 128
    conv_ref : (1, TH, W, Coutp)  conv output tile (f32, lane-dense)
    stats_ref: (1, 1, 2, Coutp)   per-tile [sum, sum_sq] over (TH*W) rows
    """
    _, TH, Wp, Cin = xm_ref.shape
    Kdim, Coutp = w_ref.shape
    W = Wp - 2

    xm = xm_ref[0].astype(jnp.float32)          # (TH, Wp, Cin)
    xh = xh_ref[0].astype(jnp.float32)          # (2,  Wp, Cin)
    x = jnp.concatenate([xm, xh], axis=0)       # (TH+2, Wp, Cin)

    # im2col: K ordered (kh, kw, ci) to match w_ref's reshape of HWIO weights.
    parts = []
    for kh in range(KS):
        for kw in range(KS):
            parts.append(x[kh:kh + TH, kw:kw + W, :])          # (TH, W, Cin)
    patches = jnp.concatenate(parts, axis=-1)                  # (TH, W, 9*Cin)
    patches = patches.reshape(TH * W, Kdim)                    # (TH*W, 9*Cin)

    # Single MXU matmul per tile; accumulation over K happens inside the MXU.
    acc = jnp.dot(patches, w_ref[...], preferred_element_type=jnp.float32)  # (TH*W, Coutp)

    conv_ref[...] = acc.reshape(1, TH, W, Coutp)

    s = jnp.sum(acc, axis=0, keepdims=True)                    # (1, Coutp)
    ss = jnp.sum(acc * acc, axis=0, keepdims=True)             # (1, Coutp)
    stats_ref[...] = jnp.concatenate([s, ss], axis=0).reshape(1, 1, 2, Coutp)


def bn_apply_kernel(conv_ref, scale_ref, shift_ref, out_ref):
    """Pass 2: y = conv * scale + shift (per-channel affine from global batch stats)."""
    Cout = out_ref.shape[-1]
    conv = conv_ref[...]                                       # (1, TH, W, Coutp) f32
    scale = scale_ref[...].reshape(1, 1, 1, -1)                # (1,1,1,Coutp)
    shift = shift_ref[...].reshape(1, 1, 1, -1)
    y = conv * scale + shift
    out_ref[...] = y[..., :Cout].astype(out_ref.dtype)


def conv_bn_relu_forward(x_nchw, weight_oihw, gamma, beta, *, row_tile=8):
    """x_nchw: (N, Cin, H, W); weight_oihw: (Cout, Cin, 3, 3); gamma/beta: (Cout,)."""
    N, Cin, H, W = x_nchw.shape
    Cout = weight_oihw.shape[0]

    TH = min(row_tile, H)
    assert H % TH == 0 and TH % 2 == 0, "row tile must be even and divide H"
    n_tiles = H // TH
    Coutp = ((Cout + LANES - 1) // LANES) * LANES
    Wp, Hp = W + 2, H + 2
    Kdim = KS * KS * Cin

    # ---- wrapper glue: NCHW -> NHWC + 1-px spatial pad (single fused XLA copy) ----
    x_nhwc = jnp.transpose(x_nchw, (0, 2, 3, 1))                       # (N, H, W, Cin)
    x_pad = jnp.pad(x_nhwc, ((0, 0), (1, 1), (1, 1), (0, 0)))          # (N, Hp, Wp, Cin)

    w_hwio = jnp.transpose(weight_oihw, (2, 3, 1, 0)).astype(jnp.float32)  # (3,3,Cin,Cout)
    w2d = jnp.pad(w_hwio.reshape(Kdim, Cout), ((0, 0), (0, Coutp - Cout)))  # (Kdim, Coutp)

    grid = (N, n_tiles)
    cparams = pltpu.CompilerParams(
        dimension_semantics=("parallel", "parallel"),
        vmem_limit_bytes=32 * 1024 * 1024,
    )

    # -------------------- pass 1: conv + partial BN stats --------------------
    conv_f32, stats = pl.pallas_call(
        conv_stats_kernel,
        out_shape=(
            jax.ShapeDtypeStruct((N, H, W, Coutp), jnp.float32),
            jax.ShapeDtypeStruct((N, n_tiles, 2, Coutp), jnp.float32),
        ),
        grid_spec=pltpu.PrefetchScalarGridSpec(
            num_scalar_prefetch=0,
            grid=grid,
            in_specs=[
                # main TH rows of the padded image for this tile
                pl.BlockSpec((1, TH, Wp, Cin), lambda n, t: (n, t, 0, 0)),
                # 2-row halo = the first 2 padded rows of the next tile
                pl.BlockSpec((1, 2, Wp, Cin),
                             lambda n, t: (n, (t + 1) * (TH // 2), 0, 0)),
                # weights: grid-invariant block
                pl.BlockSpec((Kdim, Coutp), lambda n, t: (0, 0)),
            ],
            out_specs=[
                pl.BlockSpec((1, TH, W, Coutp), lambda n, t: (n, t, 0, 0)),
                pl.BlockSpec((1, 1, 2, Coutp), lambda n, t: (n, t, 0, 0)),
            ],
        ),
        compiler_params=cparams,
    )(x_pad, x_pad, w2d)

    # ---- finish BN statistics (tiny (Coutp,) vectors; plain JAX is fine) ----
    count = float(N * H * W)
    ch_sum = jnp.sum(stats[:, :, 0, :], axis=(0, 1))                   # (Coutp,)
    ch_sq = jnp.sum(stats[:, :, 1, :], axis=(0, 1))
    mean = ch_sum / count
    var = jnp.maximum(ch_sq / count - mean * mean, 0.0)                # biased variance
    inv = jax.lax.rsqrt(var + EPS)
    gamma_p = jnp.pad(gamma.astype(jnp.float32), (0, Coutp - Cout))
    beta_p = jnp.pad(beta.astype(jnp.float32), (0, Coutp - Cout))
    scale = (gamma_p * inv).reshape(1, Coutp)
    shift = (beta_p - mean * gamma_p * inv).reshape(1, Coutp)

    # -------------------- pass 2: apply BN affine, tiled --------------------
    y_nhwc = pl.pallas_call(
        bn_apply_kernel,
        out_shape=jax.ShapeDtypeStruct((N, H, W, Cout), x_nchw.dtype),
        grid_spec=pltpu.PrefetchScalarGridSpec(
            num_scalar_prefetch=0,
            grid=grid,
            in_specs=[
                pl.BlockSpec((1, TH, W, Coutp), lambda n, t: (n, t, 0, 0)),
                pl.BlockSpec((1, Coutp), lambda n, t: (0, 0)),
                pl.BlockSpec((1, Coutp), lambda n, t: (0, 0)),
            ],
            out_specs=pl.BlockSpec((1, TH, W, Cout), lambda n, t: (n, t, 0, 0)),
        ),
        compiler_params=cparams,
    )(conv_f32, scale, shift)

    return jnp.transpose(y_nhwc, (0, 3, 1, 2))                          # back to NCHW


def _reference(x_nchw, weight_oihw, gamma, beta):
    """Pure-JAX reference: conv2d(pad=1) + training-mode BN (no ReLU)."""
    feat = jax.lax.conv_general_dilated(
        x_nchw.astype(jnp.float32), weight_oihw.astype(jnp.float32),
        window_strides=(1, 1), padding=((1, 1), (1, 1)),
        dimension_numbers=("NCHW", "OIHW", "NCHW"))
    mean = jnp.mean(feat, axis=(0, 2, 3), keepdims=True)
    var = jnp.mean((feat - mean) ** 2, axis=(0, 2, 3), keepdims=True)
    g = gamma.reshape(1, -1, 1, 1)
    b = beta.reshape(1, -1, 1, 1)
    return (feat - mean) * jax.lax.rsqrt(var + EPS) * g + b


if __name__ == "__main__":
    key = jax.random.PRNGKey(0)
    N, Cin, Cout, H, W = 2, 4, 8, 16, 16

    k_x, k_w = jax.random.split(key)
    x = jax.random.normal(k_x, (N, Cin, H, W), dtype=jnp.float32)

    # Deterministic kaiming_normal_(a=1): gain = sqrt(2/(1+a^2)) = 1, fan_in = Cin*ks*ks
    fan_in = Cin * KS * KS
    std = 1.0 / (fan_in ** 0.5)
    weight = std * jax.random.normal(k_w, (Cout, Cin, KS, KS), dtype=jnp.float32)

    # BatchNorm2d affine params at init
    gamma = jnp.ones((Cout,), dtype=jnp.float32)
    beta = jnp.zeros((Cout,), dtype=jnp.float32)

    out = conv_bn_relu_forward(x, weight, gamma, beta)
    out = jax.block_until_ready(out)

    ref = _reference(x, weight, gamma, beta)
    assert out.shape == (N, Cout, H, W), out.shape
    assert jnp.allclose(out, ref, atol=1e-4, rtol=1e-4), float(jnp.max(jnp.abs(out - ref)))

    print("KERNEL_OK")
</pallas_src>

<mosaic_0001>
module attributes {stable_mosaic.version = 11 : i64} {
  func.func @conv_stats_kernel(%arg0: i32, %arg1: i32, %arg2: memref<1x8x18x4xf32, #tpu.memory_space<vmem>>, %arg3: memref<1x2x18x4xf32, #tpu.memory_space<vmem>>, %arg4: memref<36x128xf32, #tpu.memory_space<vmem>>, %arg5: memref<1x8x16x128xf32, #tpu.memory_space<vmem>>, %arg6: memref<1x1x2x128xf32, #tpu.memory_space<vmem>>) attributes {dimension_semantics = [#tpu.dimension_semantics<parallel>, #tpu.dimension_semantics<parallel>], iteration_bounds = array<i64: 2, 2>, scalar_prefetch = 0 : i64, scratch_operands = 0 : i64, tpu.core_type = #tpu.core_type<tc>, window_params = [{transform_indices = @transform_0, window_bounds = array<i64: 1, 8, 18, 4>}, {transform_indices = @transform_1, window_bounds = array<i64: 1, 2, 18, 4>}, {pipeline_mode = #tpu.pipeline_mode<synchronous>, transform_indices = @transform_2, window_bounds = array<i64: 36, 128>}, {transform_indices = @transform_3, window_bounds = array<i64: 1, 8, 16, 128>}, {transform_indices = @transform_4, window_bounds = array<i64: 1, 1, 2, 128>}]} {
    %c0 = arith.constant 0 : index
    %c0_0 = arith.constant 0 : index
    %c0_1 = arith.constant 0 : index
    %c0_2 = arith.constant 0 : index
    %0 = vector.load %arg2[%c0, %c0_0, %c0_1, %c0_2] : memref<1x8x18x4xf32, #tpu.memory_space<vmem>>, vector<1x8x18x4xf32>
    %1 = vector.shape_cast %0 : vector<1x8x18x4xf32> to vector<8x18x4xf32>
    %c0_3 = arith.constant 0 : index
    %c0_4 = arith.constant 0 : index
    %c0_5 = arith.constant 0 : index
    %c0_6 = arith.constant 0 : index
    %2 = vector.load %arg3[%c0_3, %c0_4, %c0_5, %c0_6] : memref<1x2x18x4xf32, #tpu.memory_space<vmem>>, vector<1x2x18x4xf32>
    %3 = vector.shape_cast %2 : vector<1x2x18x4xf32> to vector<2x18x4xf32>
    %4 = tpu.concatenate %1, %3 in 0 : vector<8x18x4xf32>, vector<2x18x4xf32> -> vector<10x18x4xf32>
    %5 = vector.extract_strided_slice %4 {offsets = [0, 0, 0], sizes = [8, 16, 4], strides = [1, 1, 1]} : vector<10x18x4xf32> to vector<8x16x4xf32>
    %6 = vector.extract_strided_slice %4 {offsets = [0, 1, 0], sizes = [8, 16, 4], strides = [1, 1, 1]} : vector<10x18x4xf32> to vector<8x16x4xf32>
    %7 = vector.extract_strided_slice %4 {offsets = [0, 2, 0], sizes = [8, 16, 4], strides = [1, 1, 1]} : vector<10x18x4xf32> to vector<8x16x4xf32>
    %8 = vector.extract_strided_slice %4 {offsets = [1, 0, 0], sizes = [8, 16, 4], strides = [1, 1, 1]} : vector<10x18x4xf32> to vector<8x16x4xf32>
    %9 = vector.extract_strided_slice %4 {offsets = [1, 1, 0], sizes = [8, 16, 4], strides = [1, 1, 1]} : vector<10x18x4xf32> to vector<8x16x4xf32>
    %10 = vector.extract_strided_slice %4 {offsets = [1, 2, 0], sizes = [8, 16, 4], strides = [1, 1, 1]} : vector<10x18x4xf32> to vector<8x16x4xf32>
    %11 = vector.extract_strided_slice %4 {offsets = [2, 0, 0], sizes = [8, 16, 4], strides = [1, 1, 1]} : vector<10x18x4xf32> to vector<8x16x4xf32>
    %12 = vector.extract_strided_slice %4 {offsets = [2, 1, 0], sizes = [8, 16, 4], strides = [1, 1, 1]} : vector<10x18x4xf32> to vector<8x16x4xf32>
    %13 = vector.extract_strided_slice %4 {offsets = [2, 2, 0], sizes = [8, 16, 4], strides = [1, 1, 1]} : vector<10x18x4xf32> to vector<8x16x4xf32>
    %14 = tpu.concatenate %5, %6, %7, %8, %9, %10, %11, %12, %13 in 2 : vector<8x16x4xf32>, vector<8x16x4xf32>, vector<8x16x4xf32>, vector<8x16x4xf32>, vector<8x16x4xf32>, vector<8x16x4xf32>, vector<8x16x4xf32>, vector<8x16x4xf32>, vector<8x16x4xf32> -> vector<8x16x36xf32>
    %15 = vector.shape_cast %14 : vector<8x16x36xf32> to vector<128x36xf32>
    %c0_7 = arith.constant 0 : index
    %c0_8 = arith.constant 0 : index
    %16 = vector.load %arg4[%c0_7, %c0_8] : memref<36x128xf32, #tpu.memory_space<vmem>>, vector<36x128xf32>
    %cst = arith.constant dense<0.000000e+00> : vector<128x128xf32>
    %17 = tpu.matmul %15, %16, %cst {dimension_numbers = #tpu.dot_dimension_numbers<[1], [0], [0], [1], [0, 0, 1, 1], [], []>} : vector<128x36xf32>, vector<36x128xf32>, vector<128x128xf32> -> vector<128x128xf32>
    %18 = vector.shape_cast %17 : vector<128x128xf32> to vector<1x8x16x128xf32>
    %c0_9 = arith.constant 0 : index
    %c0_10 = arith.constant 0 : index
    %c0_11 = arith.constant 0 : index
    %c0_12 = arith.constant 0 : index
    %19 = vector.load %arg5[%c0_9, %c0_10, %c0_11, %c0_12] : memref<1x8x16x128xf32, #tpu.memory_space<vmem>>, vector<1x8x16x128xf32>
    tpu.vector_store %arg5[%c0_9, %c0_10, %c0_11, %c0_12], %18 {strides = array<i32>} : memref<1x8x16x128xf32, #tpu.memory_space<vmem>>, vector<1x8x16x128xf32>,
    %cst_13 = arith.constant dense<0.000000e+00> : vector<128xf32>
    %20 = vector.multi_reduction <add>, %17, %cst_13 [0] : vector<128x128xf32> to vector<128xf32>
    %21 = vector.shape_cast %20 : vector<128xf32> to vector<1x128xf32>
    %22 = arith.mulf %17, %17 : vector<128x128xf32>
    %cst_14 = arith.constant dense<0.000000e+00> : vector<128xf32>
    %23 = vector.multi_reduction <add>, %22, %cst_14 [0] : vector<128x128xf32> to vector<128xf32>
    %24 = vector.shape_cast %23 : vector<128xf32> to vector<1x128xf32>
    %25 = tpu.concatenate %21, %24 in 0 : vector<1x128xf32>, vector<1x128xf32> -> vector<2x128xf32>
    %26 = vector.shape_cast %25 : vector<2x128xf32> to vector<1x1x2x128xf32>
    %c0_15 = arith.constant 0 : index
    %c0_16 = arith.constant 0 : index
    %c0_17 = arith.constant 0 : index
    %c0_18 = arith.constant 0 : index
    %27 = vector.load %arg6[%c0_15, %c0_16, %c0_17, %c0_18] : memref<1x1x2x128xf32, #tpu.memory_space<vmem>>, vector<1x1x2x128xf32>
    tpu.vector_store %arg6[%c0_15, %c0_16, %c0_17, %c0_18], %26 {strides = array<i32>} : memref<1x1x2x128xf32, #tpu.memory_space<vmem>>, vector<1x1x2x128xf32>,
    return
  }
  func.func @transform_0(%arg0: i32, %arg1: i32) -> (i32, i32, i32, i32) {
    %c0_i32 = arith.constant 0 : i32
    %c0_i32_0 = arith.constant 0 : i32
    %c0_i32_1 = arith.constant 0 : i32
    return %arg0, %arg1, %c0_i32, %c0_i32_0 : i32, i32, i32, i32
  }
  func.func @transform_1(%arg0: i32, %arg1: i32) -> (i32, i32, i32, i32) {
    %c1_i32 = arith.constant 1 : i32
    %0 = arith.addi %arg1, %c1_i32 : i32
    %c4_i32 = arith.constant 4 : i32
    %1 = arith.muli %0, %c4_i32 : i32
    %c0_i32 = arith.constant 0 : i32
    %c0_i32_0 = arith.constant 0 : i32
    %c0_i32_1 = arith.constant 0 : i32
    return %arg0, %1, %c0_i32, %c0_i32_0 : i32, i32, i32, i32
  }
  func.func @transform_2(%arg0: i32, %arg1: i32) -> (i32, i32) {
    %c0_i32 = arith.constant 0 : i32
    %c0_i32_0 = arith.constant 0 : i32
    %c0_i32_1 = arith.constant 0 : i32
    return %c0_i32, %c0_i32_0 : i32, i32
  }
  func.func @transform_3(%arg0: i32, %arg1: i32) -> (i32, i32, i32, i32) {
    %c0_i32 = arith.constant 0 : i32
    %c0_i32_0 = arith.constant 0 : i32
    %c0_i32_1 = arith.constant 0 : i32
    return %arg0, %arg1, %c0_i32, %c0_i32_0 : i32, i32, i32, i32
  }
  func.func @transform_4(%arg0: i32, %arg1: i32) -> (i32, i32, i32, i32) {
    %c0_i32 = arith.constant 0 : i32
    %c0_i32_0 = arith.constant 0 : i32
    %c0_i32_1 = arith.constant 0 : i32
    return %arg0, %arg1, %c0_i32, %c0_i32_0 : i32, i32, i32, i32
  }
}

</mosaic_0001>

<bundles_post_ra>
// kernel: tpu_custom_call.1
= control target key start
LH: loop header
LB: loop body
LE: loop exit
PB: predicated region body
PF: predicated region fallthrough
CT: control target
= control target key end

     0   :  { %s2646_s0 = inlined_call_operand.vmem [shape: f32[2,18,18,4], index: 0, kind: input, shape index: {}]   ;;  %s2647_s1 = inlined_call_operand.vmem [shape: f32[2,18,18,4], index: 1, kind: input, shape index: {}]   ;;  %s2648_s2 = inlined_call_operand.vmem [shape: f32[36,128], index: 2, kind: input, shape index: {}]   ;;  %s2649_s3 = inlined_call_operand.hbm [shape: f32[2,16,16,128], index: 3, kind: output, shape index: {0}]   ;;  %s2650_s4 = inlined_call_operand.hbm [shape: f32[2,2,2,128], index: 4, kind: output, shape index: {1}]  }
   0x1   :  { %2652 = sst [smem:[#allocation8_spill]] %s2646_s0 }
   0x2   :  { %10 = vsyncpa [#allocation3], 0 }
   0x3   :  { %12 = vsyncpa [#allocation3 + $0x1], 0 }
   0x4   :  { %13 = vsyncpa [#allocation5], 0 }
   0x5   :  { %15 = vsyncpa [#allocation5 + $0x1], 0  ;;  %s1700_s15 = smov 0   ;;  %s1702_s16 = smov 0  }
   0x6   :  { %s1704_s17 = smov 0   ;;  %s1706_s18 = smov 0  }
   0x7   :  { %s1708_s19 = smov 0   ;;  %s1710_s20 = smov 0  }
   0x8   :  { %s1712_s21 = smov 0   ;;  %s1714_s22 = smov 0  }
   0x9 LB: > { %s1384_s23 = sadd.s32 4294967295, %s1664_s22   ;;  %s1385_s24 = sadd.s32 4294967294, %s1664_s22   ;;  %s1664_s22 = sphi %s1714_s22, %s21_s22   ;;  %s1660_s21 = sphi %s1712_s21, %s2664_s21   ;;  %s1656_s20 = sphi %s1710_s20, %s2663_s20   ;;  %s1652_s19 = sphi %s1708_s19, %s2662_s19   ;;  %s1648_s18 = sphi %s1706_s18, %s2661_s18   ;;  %s1644_s17 = sphi %s1704_s17, %s2660_s17   ;;  %s1640_s16 = sphi %s1702_s16, %s2659_s16   ;;  %s1636_s15 = sphi %s1700_s15, %s2658_s15  }
   0xa   : > { %s30_s25 = sadd.s32 1, %s1656_s20  ;;  %s33_s26 = sadd.s32 1, %s1660_s21 }
   0xb   : > { %p31_p0 = scmp.ge.s32.totalorder %s30_s25, 2  ;;  %p133_p1 = scmp.ne.s32.totalorder %s1644_s17, %s1640_s16 }
   0xc   : > { %p134_p2 = scmp.eq.s32.totalorder %s1384_s23, 3  ;;  %p139_p5 = scmp.ne.s32.totalorder %s1640_s16, %s1636_s15 }
   0xd   : > { %s2666_s25 = smov (%p31_p0, %s30_s25), 0  ;;  %s2668_s26 = smov (!%p31_p0, %s33_s26), %s1660_s21 }
   0xe   : > { %s119_s27 = ssub.s32 %s1656_s20, %s2666_s25  ;;  %p1751_p3 = por %p134_p2, %p133_p1 }
   0xf   : > { %p35_p4 = scmp.ge.s32.totalorder %s2668_s26, 2  ;;  %p140_p6 = scmp.eq.s32.totalorder %s1385_s24, 3 }
  0x10   : > { %p1390_p7 = scmp.ge.s32.totalorder %s1664_s22, 1  ;;  %p231_p9 = scmp.lt.s32.totalorder %s1664_s22, 5 }
  0x11   : > { %s2670_s26 = smov (%p35_p4, %s2668_s26), 0  ;;  %p1760_p8 = por %p140_p6, %p139_p5 }
  0x12   : > { %s118_s30 = ssub.s32 %s1660_s21, %s2670_s26  ;;  %s123_s5 = sadd.s32 1, %s1644_s17 }
  0x13   : > { %s120_s6 = sor.u32 %s119_s27, %s118_s30  ;;  %p232_p10 = pnand %p1390_p7, %p231_p9 }
  0x14   : > { %p121_p11 = scmp.eq.s32.totalorder %s120_s6, 0  ;;  %s1772_s8 = sshll.u32 (!%p232_p10), %s1648_s18, 3 }
  0x15   : > { %235 = sbr.rel (%p232_p10) target bundleno = 644 (0x284), region = 32  ;;  %p290_p12 = scmp.lt.s32.totalorder (!%p232_p10), %s1652_s19, 1 }
  0x16   : > { %s1769_s7 = scalar_select %p121_p11, %s1644_s17, %s123_s5  }
  0x17   : > { %p292_p13 = scmp.lt.s32.totalorder (!%p232_p10), %s1772_s8, 17  ;;  %s1434_s14 = sadd.s32 (!%p232_p10), 8, %s1772_s8 }
  0x18   : > { %s2655_s0 = sld [smem:[#allocation8_spill]] (!%p232_p10)  ;;  %p1798_p0 = scmp.lt.s32.totalorder (!%p232_p10), %s1434_s14, 17 }
  0x19   : > { %s1666_s6 = smov (!%p232_p10), 4   ;;  %s1669_s24 = smov (!%p232_p10), 20  }
  0x1a   : > { %s1777_s9 = scalar_select %p290_p12, %s1652_s19, 1  ;;  %vm375_vm0 = vcmask 1046528   ;;  %vm464_vm1 = vcmask 1045504   ;;  %vm884_vm2 = vcmask 64512   ;;  %vm867_vm3 = vcmask 31744  }
  0x1b   : > { %s293_s10 = scalar_select %p292_p13, %s1772_s8, 17  ;;  %vm901_vm4 = vcmask 97280   ;;  %vm1057_vm5 = vcmask 1043456   ;;  %vm918_vm6 = vcmask 130048   ;;  %vm935_vm7 = vcmask 162816  }
  0x1c   : > { %s1451_s11 = smul.u32 54, %s1777_s9  ;;  %s2672_s14 = smov (!%p1798_p0, %s1434_s14), 17  ;;  %vm952_vm8 = vcmask 195584   ;;  %vm969_vm9 = vcmask 228352   ;;  %vm986_vm10 = vcmask 261120   ;;  %vm1008_vm11 = vcmask 293888  }
  0x1d   : > { %s1450_s12 = smul.u32 3, %s293_s10  ;;  %s2651_s9 = smov 8  }
  0x1e   : > { %s1452_s8 = smul.u32 3, %s2672_s14  ;;  %s1670_s27 = smov 16  }
  0x1f   : > { %s296_s13 = sadd.s32 %s1451_s11, %s1450_s12  ;;  %s1672_s5 = smov 28  }
  0x20   : > { %s1394_s23 = sshll.u32 %s296_s13, 3  ;;  %s1858_s10 = sadd.s32 %s1452_s8, %s1451_s11 }
  0x21   : > { %s1787_s30 = scalar_lea.vmem %s2655_s0, %s1394_s23  ;;  %s1668_s11 = smov 12  }
  0x22   : > { %v1790_v0 = vld [vmem:[%s1787_s30 + $0x30] sm:$0xff]  ;;  %v1793_v1 = vld [vmem:[%s1787_s30 + $0x38] sm:$0xff]  ;;  %v1805_v5 = vld [vmem:[%s1787_s30 + $0x20] sm:$0xff]  ;;  %s1397_s12 = sshll.u32 %s1858_s10, 3  ;;  %s1558_s8 = scalar_lea.hbm %s2649_s3, 512 }
  0x23   : > { %v1796_v2 = vld [vmem:[%s1787_s30 + $0x18] sm:$0xff]  ;;  %v386_v3 = vrot.slane %v1790_v0, 1  ;;  %v387_v4 = vrot.slane %v1793_v1, 1  ;;  %v1809_v7 = vld [vmem:[%s1787_s30] sm:$0xff]  ;;  %v1812_v8 = vld [vmem:[%s1787_s30 + $0x8] sm:$0xff]  ;;  %v382_v9 = vrot.slane %v1805_v5, 1  ;;  %s2090_s23 = scalar_lea.vmem %s2647_s1, %s1397_s12 }
  0x24   : > { %v381_v6 = vrot.slane %v1796_v2, 1  ;;  %v376_v10 = vrot.slane %v1809_v7, 1  ;;  %v377_v11 = vrot.slane %v1812_v8, 1  ;;  %v1818_v12 = vld [vmem:[%s1787_s30 + $0x40] sm:$0x3]  ;;  %v1854_v25 = vld [vmem:[%s1787_s30 + $0x68] sm:$0xff] }
  0x25   : > { %v1821_v13 = vsel %vm375_vm0, %v386_v3, %v387_v4  ;;  %v1824_v14 = vld [vmem:[%s1787_s30 + $0x28] sm:$0x3]  ;;  %v1827_v15 = vld [vmem:[%s1787_s30 + $0x10] sm:$0x3]  ;;  %v389_v18 = vrot.slane %v1818_v12, 1  ;;  %v1851_v24 = vld [vmem:[%s1787_s30 + $0x60] sm:$0xff] }
  0x26   : > { %424 = vrot.lane.b32.xlu2 %v1821_v13, %s1666_s6  ;;  %v1832_v16 = vsel %vm375_vm0, %v381_v6, %v382_v9  ;;  %v378_v17 = vsel %vm375_vm0, %v376_v10, %v377_v11  ;;  %v384_v19 = vrot.slane %v1824_v14, 1  ;;  %v379_v20 = vrot.slane %v1827_v15, 1  ;;  %v1861_v26 = vld [vmem:[%s1787_s30 + $0x50] sm:$0xff]  ;;  %v1864_v27 = vld [vmem:[%s1787_s30 + $0x58] sm:$0x3]  ;;  %v1867_v28 = vld [vmem:[%s1787_s30 + $0x48] sm:$0xff] }
  0x27   : > { %420 = vrot.lane.b32.xlu1 %v1832_v16, %s1666_s6  ;;  %416 = vrot.lane.b32.xlu0 %v378_v17, %s1666_s6  ;;  %v1844_v21 = vsel %vm375_vm0, %v387_v4, %v389_v18  ;;  %v396_v29 = vrot.slane %v1851_v24, 1  ;;  %v397_v30 = vrot.slane %v1854_v25, 1  ;;  %v392_v31 = vrot.slane %v1861_v26, 1  ;;  %v1889_v37 = vld [vmem:[%s1787_s30 + $0x80] sm:$0xff]  ;;  %v1892_v38 = vld [vmem:[%s1787_s30 + $0x88] sm:$0x3] }
  0x28   : > { %v1847_v22 = vsel %vm375_vm0, %v382_v9, %v384_v19  ;;  %v380_v23 = vsel %vm375_vm0, %v377_v11, %v379_v20  ;;  %v394_v32 = vrot.slane %v1864_v27, 1  ;;  %v391_v33 = vrot.slane %v1867_v28, 1  ;;  %v1895_v39 = vld [vmem:[%s1787_s30 + $0x78] sm:$0xff]  ;;  %v1898_v40 = vld [vmem:[%s1787_s30 + $0x70] sm:$0x3]  ;;  %v1920_v48 = vld [vmem:[%s1787_s30 + $0xa8] sm:$0xff] }
  0x29   : > { %v1880_v34 = vsel %vm375_vm0, %v396_v29, %v397_v30  ;;  %v402_v41 = vrot.slane %v1889_v37, 1  ;;  %v404_v42 = vrot.slane %v1892_v38, 1  ;;  %v401_v43 = vrot.slane %v1895_v39, 1  ;;  %v1923_v49 = vld [vmem:[%s1787_s30 + $0xb0] sm:$0xff]  ;;  %v1926_v50 = vld [vmem:[%s1787_s30 + $0x98] sm:$0xff] }
  0x2a   : > { %v1883_v35 = vsel %vm375_vm0, %v392_v31, %v394_v32  ;;  %v1886_v36 = vsel %vm375_vm0, %v391_v33, %v392_v31  ;;  %v399_v44 = vrot.slane %v1898_v40, 1  ;;  %v1929_v51 = vld [vmem:[%s1787_s30 + $0xa0] sm:$0x3]  ;;  %v1932_v52 = vld [vmem:[%s1787_s30 + $0x90] sm:$0xff]  ;;  %v411_v53 = vrot.slane %v1920_v48, 1 }
  0x2b   : > { %v1911_v45 = vsel %vm375_vm0, %v402_v41, %v404_v42  ;;  %v1914_v46 = vsel %vm375_vm0, %v401_v43, %v402_v41  ;;  %v412_v54 = vrot.slane %v1923_v49, 1  ;;  %v407_v55 = vrot.slane %v1926_v50, 1  ;;  %v1955_v61 = vld [vmem:[%s1787_s30 + $0xb8] sm:$0x3]  ;;  %s1671_s30 = smov 32  }
  0x2c   : > { %v1917_v47 = vsel %vm375_vm0, %v397_v30, %v399_v44  ;;  %v409_v56 = vrot.slane %v1929_v51, 1  ;;  %v406_v57 = vrot.slane %v1932_v52, 1  ;;  %v466_v62 = vrot.slane %v1812_v8, 2 }
  0x2d   : > { %v1946_v58 = vsel %vm375_vm0, %v411_v53, %v412_v54  ;;  %v468_v63 = vrot.slane %v1827_v15, 2  ;;  %v465_v3 = vrot.slane %v1809_v7, 2  ;;  %v414_v4 = vrot.slane %v1955_v61, 1 }
  0x2e   : > { %426 = vrot.lane.b32.xlu2 %v1844_v21, %s1666_s6  ;;  %v1949_v59 = vsel %vm375_vm0, %v407_v55, %v409_v56  ;;  %v1952_v60 = vsel %vm375_vm0, %v406_v57, %v407_v55  ;;  %v475_v11 = vrot.slane %v1790_v0, 2  ;;  %v476_v15 = vrot.slane %v1793_v1, 2 }
  0x2f   : > { %422 = vrot.lane.b32.xlu1 %v1847_v22, %s1666_s6  ;;  %418 = vrot.lane.b32.xlu0 %v380_v23, %s1666_s6  ;;  %v469_v6 = vsel %vm464_vm1, %v466_v62, %v468_v63  ;;  %v467_v9 = vsel %vm464_vm1, %v465_v3, %v466_v62  ;;  %v1970_v10 = vsel %vm375_vm0, %v412_v54, %v414_v4  ;;  %v471_v17 = vrot.slane %v1805_v5, 2 }
  0x30   : > { %v473_v18 = vrot.slane %v1824_v14, 2  ;;  %v470_v19 = vrot.slane %v1796_v2, 2  ;;  %v1982_v20 = vsel %vm464_vm1, %v475_v11, %v476_v15  ;;  %v481_v14 = vrot.slane %v1861_v26, 2 }
  0x31   : > { %v483_v30 = vrot.slane %v1864_v27, 2  ;;  %v480_v31 = vrot.slane %v1867_v28, 2  ;;  %v478_v32 = vrot.slane %v1818_v12, 2  ;;  %v490_v12 = vrot.slane %v1895_v39, 2 }
  0x32   : > { %v1985_v23 = vsel %vm464_vm1, %v471_v17, %v473_v18  ;;  %v1988_v29 = vsel %vm464_vm1, %v470_v19, %v471_v17  ;;  %v491_v27 = vrot.slane %v1889_v37, 2  ;;  %v486_v43 = vrot.slane %v1854_v25, 2 }
  0x33   : > { %v2001_v33 = vsel %vm464_vm1, %v481_v14, %v483_v30  ;;  %v2004_v41 = vsel %vm464_vm1, %v480_v31, %v481_v14  ;;  %v2007_v42 = vsel %vm464_vm1, %v476_v15, %v478_v32  ;;  %v488_v44 = vrot.slane %v1898_v40, 2  ;;  %v2093_v31 = vld [vmem:[%s2090_s23 + $0x8] sm:$0xff]  ;;  %v2096_v32 = vld [vmem:[%s2090_s23] sm:$0xff] }
  0x34   : > { %v485_v53 = vrot.slane %v1851_v24, 2  ;;  %v2021_v54 = vsel %vm464_vm1, %v490_v12, %v491_v27  ;;  %v496_v40 = vrot.slane %v1926_v50, 2  ;;  %v498_v57 = vrot.slane %v1929_v51, 2 }
  0x35   : > { %v2024_v55 = vsel %vm464_vm1, %v486_v43, %v488_v44  ;;  %v495_v62 = vrot.slane %v1932_v52, 2  ;;  %v493_v63 = vrot.slane %v1892_v38, 2  ;;  %v501_v38 = vrot.slane %v1923_v49, 2 }
  0x36   : > { %432 = vrot.lane.b32.xlu2 %v1880_v34, %s1666_s6  ;;  %v2027_v56 = vsel %vm464_vm1, %v485_v53, %v486_v43  ;;  %v2040_v3 = vsel %vm464_vm1, %v496_v40, %v498_v57  ;;  %v503_v51 = vrot.slane %v1955_v61, 2 }
  0x37   : > { %430 = vrot.lane.b32.xlu1 %v1883_v35, %s1666_s6  ;;  %428 = vrot.lane.b32.xlu0 %v1886_v36, %s1666_s6  ;;  %v2043_v4 = vsel %vm464_vm1, %v495_v62, %v496_v40 }
  0x38   : > { %v2058_v11 = vsel %vm464_vm1, %v501_v38, %v503_v51 }
  0x3e   : > { %438 = vrot.lane.b32.xlu2 %v1911_v45, %s1666_s6 }
  0x3f   : > { %436 = vrot.lane.b32.xlu1 %v1914_v46, %s1666_s6  ;;  %434 = vrot.lane.b32.xlu0 %v1917_v47, %s1666_s6 }
  0x46   : > { %444 = vrot.lane.b32.xlu2 %v1946_v58, %s1666_s6 }
  0x47   : > { %442 = vrot.lane.b32.xlu1 %v1949_v59, %s1666_s6  ;;  %440 = vrot.lane.b32.xlu0 %v1952_v60, %s1666_s6 }
  0x4e   : > { %507 = vrot.lane.b32.xlu2 %v469_v6, %s2651_s9  ;;  %v2046_v6 = vsel %vm464_vm1, %v491_v27, %v493_v63 }
  0x4f   : > { %505 = vrot.lane.b32.xlu1 %v467_v9, %s2651_s9  ;;  %446 = vrot.lane.b32.xlu0 %v1970_v10, %s1666_s6  ;;  %v500_v9 = vrot.slane %v1920_v48, 2  ;;  %s1673_s6 = smov 24  }
  0x51   : > { %v2061_v15 = vsel %vm464_vm1, %v500_v9, %v501_v38 }
  0x56   : > { %513 = vrot.lane.b32.xlu2 %v1982_v20, %s2651_s9 }
  0x57   : > { %511 = vrot.lane.b32.xlu1 %v1985_v23, %s2651_s9  ;;  %509 = vrot.lane.b32.xlu0 %v1988_v29, %s2651_s9 }
  0x5e   : > { %519 = vrot.lane.b32.xlu2 %v2001_v33, %s2651_s9 }
  0x5f   : > { %517 = vrot.lane.b32.xlu1 %v2004_v41, %s2651_s9  ;;  %515 = vrot.lane.b32.xlu0 %v2007_v42, %s2651_s9 }
  0x66   : > { %525 = vrot.lane.b32.xlu2 %v2021_v54, %s2651_s9 }
  0x67   : > { %523 = vrot.lane.b32.xlu1 %v2024_v55, %s2651_s9  ;;  %521 = vrot.lane.b32.xlu0 %v2027_v56, %s2651_s9 }
  0x6e   : > { %531 = vrot.lane.b32.xlu2 %v2040_v3, %s2651_s9 }
  0x6f   : > { %529 = vrot.lane.b32.xlu1 %v2043_v4, %s2651_s9  ;;  %527 = vrot.lane.b32.xlu0 %v2046_v6, %s2651_s9 }
  0x76   : > { %555 = vrot.lane.b32.xlu2 %v1796_v2, %s1668_s11 }
  0x77   : > { %535 = vrot.lane.b32.xlu1 %v2058_v11, %s2651_s9  ;;  %533 = vrot.lane.b32.xlu0 %v2061_v15, %s2651_s9 }
  0x7e   : > { %561 = vrot.lane.b32.xlu2 %v1793_v1, %s1668_s11 }
  0x7f   : > { %559 = vrot.lane.b32.xlu1 %v1790_v0, %s1668_s11  ;;  %557 = vrot.lane.b32.xlu0 %v1805_v5, %s1668_s11 }
  0x80   : > { %v425_v61 = vpop.permute.xlu2 %424 }
  0x86   : > { %567 = vrot.lane.b32.xlu2 %v1851_v24, %s1668_s11 }
  0x87   : > { %565 = vrot.lane.b32.xlu1 %v1861_v26, %s1668_s11  ;;  %563 = vrot.lane.b32.xlu0 %v1867_v28, %s1668_s11 }
  0x88   : > { %v2074_v17 = vpop.permute.xlu2 %426 }
  0x8e   : > { %573 = vrot.lane.b32.xlu2 %v1889_v37, %s1668_s11 }
  0x8f   : > { %571 = vrot.lane.b32.xlu1 %v1895_v39, %s1668_s11  ;;  %569 = vrot.lane.b32.xlu0 %v1854_v25, %s1668_s11 }
  0x90   : > { %v2079_v18 = vpop.permute.xlu2 %432 }
  0x96   : > { %579 = vrot.lane.b32.xlu2 %v1920_v48, %s1668_s11 }
  0x97   : > { %577 = vrot.lane.b32.xlu1 %v1926_v50, %s1668_s11  ;;  %575 = vrot.lane.b32.xlu0 %v1932_v52, %s1668_s11 }
  0x98   : > { %v2085_v19 = vpop.permute.xlu2 %438 }
  0x99   : > { %v421_v14 = vpop.permute.xlu1 %420  ;;  %v417_v30 = vpop.permute.xlu0 %416 }
  0x9e   : > { %585 = vrot.lane.b32.xlu2 %v2093_v31, %s1668_s11 }
  0x9f   : > { %583 = vrot.lane.b32.xlu1 %v2096_v32, %s1668_s11  ;;  %581 = vrot.lane.b32.xlu0 %v1923_v49, %s1668_s11 }
  0xa0   : > { %v2101_v12 = vpop.permute.xlu2 %444 }
  0xa1   : > { %v423_v27 = vpop.permute.xlu1 %422  ;;  %v419_v43 = vpop.permute.xlu0 %418 }
  0xa2   : > { %v869_v44 = vsel %vm867_vm3, %v1812_v8, %v419_v43  ;;  %v872_v8 = vsel %vm867_vm3, %v1790_v0, %v425_v61 }
  0xa6   : > { %662 = vrot.lane.b32.xlu2 %v1988_v29, %s1669_s24 }
  0xa7   : > { %611 = vrot.lane.b32.xlu1 %v1847_v22, %s1670_s27  ;;  %609 = vrot.lane.b32.xlu0 %v1832_v16, %s1670_s27 }
  0xa8   : > { %v508_v53 = vpop.permute.xlu2 %507 }
  0xa9   : > { %v431_v40 = vpop.permute.xlu1 %430  ;;  %v2112_v57 = vsel %vm884_vm2, %v869_v44, %v508_v53  ;;  %v429_v62 = vpop.permute.xlu0 %428  ;;  %v868_v44 = vsel %vm867_vm3, %v1809_v7, %v417_v30  ;;  %v870_v30 = vsel %vm867_vm3, %v1796_v2, %v421_v14 }
  0xaa   : > { %v875_v38 = vsel %vm867_vm3, %v1861_v26, %v431_v40  ;;  %v874_v14 = vsel %vm867_vm3, %v1867_v28, %v429_v62 }
  0xae   : > { %819 = vrot.lane.b32.xlu2 %v1982_v20, %s1671_s30 }
  0xaf   : > { %766 = vrot.lane.b32.xlu1 %v1821_v13, %s1672_s5  ;;  %712 = vrot.lane.b32.xlu0 %v1790_v0, %s1673_s6 }
  0xb0   : > { %v514_v16 = vpop.permute.xlu2 %513 }
  0xb1   : > { %v437_v22 = vpop.permute.xlu1 %436  ;;  %v2123_v29 = vsel %vm884_vm2, %v872_v8, %v514_v16  ;;  %v435_v63 = vpop.permute.xlu0 %434 }
  0xb2   : > { %v877_v62 = vsel %vm867_vm3, %v1854_v25, %v435_v63 }
  0xb6   : > { %670 = vrot.lane.b32.xlu2 %v2004_v41, %s1669_s24 }
  0xb7   : > { %664 = vrot.lane.b32.xlu1 %v1985_v23, %s1669_s24  ;;  %617 = vrot.lane.b32.xlu0 %v1886_v36, %s1670_s27  ;;  %v878_v23 = vsel %vm867_vm3, %v1895_v39, %v437_v22 }
  0xb8   : > { %v520_v51 = vpop.permute.xlu2 %519 }
  0xb9   : > { %v443_v0 = vpop.permute.xlu1 %442  ;;  %v2134_v9 = vsel %vm884_vm2, %v875_v38, %v520_v51  ;;  %v441_v61 = vpop.permute.xlu0 %440  ;;  %v871_v38 = vsel %vm867_vm3, %v1805_v5, %v423_v27  ;;  %v873_v5 = vsel %vm867_vm3, %v1793_v1, %v2074_v17  ;;  %v876_v17 = vsel %vm867_vm3, %v1851_v24, %v2079_v18 }
  0xba   : > { %v881_v22 = vsel %vm867_vm3, %v1926_v50, %v443_v0  ;;  %v879_v18 = vsel %vm867_vm3, %v1889_v37, %v2085_v19  ;;  %v880_v63 = vsel %vm867_vm3, %v1932_v52, %v441_v61  ;;  %v882_v19 = vsel %vm867_vm3, %v1920_v48, %v2101_v12 }
  0xbe   : > { %720 = vrot.lane.b32.xlu2 %v1851_v24, %s1673_s6 }
  0xbf   : > { %714 = vrot.lane.b32.xlu1 %v1793_v1, %s1673_s6  ;;  %625 = vrot.lane.b32.xlu0 %v1914_v46, %s1670_s27 }
  0xc0   : > { %v526_v43 = vpop.permute.xlu2 %525 }
  0xc1   : > { %v2147_v53 = vsel %vm884_vm2, %v878_v23, %v526_v43  ;;  %v506_v40 = vpop.permute.xlu1 %505  ;;  %v447_v8 = vpop.permute.xlu0 %446 }
  0xc2   : > { %v885_v16 = vsel %vm884_vm2, %v868_v44, %v506_v40  ;;  %v883_v61 = vsel %vm867_vm3, %v1923_v49, %v447_v8 }
  0xc6   : > { %774 = vrot.lane.b32.xlu2 %v1880_v34, %s1672_s5 }
  0xc7   : > { %768 = vrot.lane.b32.xlu1 %v1844_v21, %s1672_s5  ;;  %678 = vrot.lane.b32.xlu0 %v2021_v54, %s1669_s24 }
  0xc8   : > { %v532_v7 = vpop.permute.xlu2 %531 }
  0xc9   : > { %v2163_v51 = vsel %vm884_vm2, %v881_v22, %v532_v7  ;;  %v512_v23 = vpop.permute.xlu1 %511  ;;  %v510_v43 = vpop.permute.xlu0 %509 }
  0xca   : > { %v888_v44 = vsel %vm884_vm2, %v871_v38, %v512_v23  ;;  %v887_v40 = vsel %vm884_vm2, %v870_v30, %v510_v43 }
  0xce   : > { %827 = vrot.lane.b32.xlu2 %v2027_v56, %s1671_s30 }
  0xcf   : > { %821 = vrot.lane.b32.xlu1 %v2007_v42, %s1671_s30  ;;  %728 = vrot.lane.b32.xlu0 %v1932_v52, %s1673_s6 }
  0xd0   : > { %v556_v2 = vpop.permute.xlu2 %555 }
  0xd1   : > { %v2179_v27 = vsel %vm901_vm4, %v885_v16, %v556_v2  ;;  %v518_v0 = vpop.permute.xlu1 %517  ;;  %v516_v22 = vpop.permute.xlu0 %515 }
  0xd2   : > { %v891_v7 = vsel %vm884_vm2, %v874_v14, %v518_v0  ;;  %v890_v30 = vsel %vm884_vm2, %v873_v5, %v516_v22 }
  0xd6   : > { %613 = vrot.lane.b32.xlu2 %v1821_v13, %s1670_s27 }
  0xd7   : > { %835 = vrot.lane.b32.xlu1 %v2043_v4, %s1671_s30  ;;  %782 = vrot.lane.b32.xlu0 %v1952_v60, %s1672_s5 }
  0xd8   : > { %v562_v1 = vpop.permute.xlu2 %561 }
  0xd9   : > { %v2195_v16 = vsel %vm901_vm4, %v888_v44, %v562_v1  ;;  %v524_v38 = vpop.permute.xlu1 %523  ;;  %v522_v23 = vpop.permute.xlu0 %521 }
  0xda   : > { %v894_v13 = vsel %vm884_vm2, %v877_v62, %v524_v38  ;;  %v2199_v43 = vsel %vm884_vm2, %v876_v17, %v522_v23 }
  0xde   : > { %672 = vrot.lane.b32.xlu2 %v2001_v33, %s1669_s24 }
  0xdf   : > { %666 = vrot.lane.b32.xlu1 %v1982_v20, %s1669_s24  ;;  %619 = vrot.lane.b32.xlu0 %v1883_v35, %s1670_s27 }
  0xe0   : > { %v568_v24 = vpop.permute.xlu2 %567 }
  0xe1   : > { %v2213_v44 = vsel %vm901_vm4, %v891_v7, %v568_v24  ;;  %v530_v2 = vpop.permute.xlu1 %529  ;;  %v528_v5 = vpop.permute.xlu0 %527 }
  0xe2   : > { %v897_v14 = vsel %vm884_vm2, %v880_v63, %v530_v2  ;;  %v2217_v20 = vsel %vm884_vm2, %v879_v18, %v528_v5  ;;  %v604_v63 = vrot.slane %v2096_v32, 1  ;;  %v605_v2 = vrot.slane %v2093_v31, 1 }
  0xe6   : > { %716 = vrot.lane.b32.xlu2 %v1867_v28, %s1673_s6 }
  0xe7   : > { %633 = vrot.lane.b32.xlu1 %v1946_v58, %s1670_s27  ;;  %627 = vrot.lane.b32.xlu0 %v1911_v45, %s1670_s27 }
  0xe8   : > { %v574_v52 = vpop.permute.xlu2 %573 }
  0xe9   : > { %v2231_v0 = vsel %vm901_vm4, %v894_v13, %v574_v52  ;;  %v536_v22 = vpop.permute.xlu1 %535  ;;  %v534_v7 = vpop.permute.xlu0 %533 }
  0xea   : > { %v900_v28 = vsel %vm884_vm2, %v883_v61, %v536_v22  ;;  %v2235_v1 = vsel %vm884_vm2, %v882_v19, %v534_v7  ;;  %v1003_v61 = vld [vmem:[%s2648_s2] sm:$0xff]  ;;  %v2301_v22 = vsel %vm375_vm0, %v604_v63, %v605_v2  ;;  %v658_v7 = vrot.slane %v2093_v31, 2 }
  0xee   : > { %686 = vrot.lane.b32.xlu2 %v2061_v15, %s1669_s24 }
  0xef   : > { %680 = vrot.lane.b32.xlu1 %v2046_v6, %s1669_s24  ;;  %722 = vrot.lane.b32.xlu0 %v1854_v25, %s1673_s6 }
  0xf0   : > { %v580_v12 = vpop.permute.xlu2 %579 }
  0xf1   : > { %v2244_v8 = vsel %vm901_vm4, %v897_v14, %v580_v12  ;;  %v560_v17 = vpop.permute.xlu1 %559  ;;  %v558_v62 = vpop.permute.xlu0 %557 }
  0xf2   : > { %v2247_v38 = vsel %vm901_vm4, %v887_v40, %v560_v17  ;;  %v2251_v23 = vsel %vm901_vm4, %v2112_v57, %v558_v62  ;;  %v1006_v57 = vld [vmem:[%s2648_s2 + $0x18] sm:$0xff] }
  0xf6   : > { %730 = vrot.lane.b32.xlu2 %v1926_v50, %s1673_s6  ;;  %v1007_v50 = vld [vmem:[%s2648_s2 + $0x20] sm:$0xf] }
  0xf7   : > { %776 = vrot.lane.b32.xlu1 %v1917_v47, %s1672_s5  ;;  %770 = vrot.lane.b32.xlu0 %v1886_v36, %s1672_s5  ;;  %v1005_v36 = vld [vmem:[%s2648_s2 + $0x10] sm:$0xff] }
  0xf8   : > { %v586_v25 = vpop.permute.xlu2 %585  ;;  %1398 = vmatpush.msk.msra.mxu0 %vm1057_vm5, %v1007_v50  ;;  %1435 = vmatpush.msk.msra.mxu1 %vm1057_vm5, %v1007_v50 }
  0xf9   : > { %v2260_v13 = vsel %vm901_vm4, %v900_v28, %v586_v25  ;;  %v566_v24 = vpop.permute.xlu1 %565  ;;  %v2262_v40 = vpop.permute.xlu0 %563  ;;  %1436 = vmatpush.msk.msra.mxu2 %vm1057_vm5, %v1007_v50  ;;  %1437 = vmatpush.msk.msra.mxu3 %vm1057_vm5, %v1007_v50 }
  0xfa   : > { %v2265_v18 = vsel %vm901_vm4, %v890_v30, %v566_v24  ;;  %1073 = vmatpush.msra.mxu0 %v1006_v57  ;;  %1438 = vmatpush.msra.mxu1 %v1006_v57 }
  0xfb   : > { %1439 = vmatpush.msra.mxu2 %v1006_v57  ;;  %1440 = vmatpush.msra.mxu3 %v1006_v57 }
  0xfc   : > { %1074 = vmatpush.msra.mxu0 %v1005_v36  ;;  %1441 = vmatpush.msra.mxu1 %v1005_v36 }
  0xfd   : > { %1442 = vmatpush.msra.mxu2 %v1005_v36  ;;  %1443 = vmatpush.msra.mxu3 %v1005_v36 }
  0xfe   : > { %829 = vrot.lane.b32.xlu2 %v2024_v55, %s1671_s30 }
  0xff   : > { %823 = vrot.lane.b32.xlu1 %v2004_v41, %s1671_s30  ;;  %736 = vrot.lane.b32.xlu0 %v2096_v32, %s1673_s6  ;;  %v1004_v41 = vld [vmem:[%s2648_s2 + $0x8] sm:$0xff] }
 0x100   : > { %v663_v30 = vpop.permute.xlu2 %662  ;;  %1075 = vmatpush.msra.mxu0 %v1004_v41  ;;  %1444 = vmatpush.msra.mxu1 %v1004_v41 }
 0x101   : > { %v572_v5 = vpop.permute.xlu1 %571  ;;  %v570_v14 = vpop.permute.xlu0 %569  ;;  %1445 = vmatpush.msra.mxu2 %v1004_v41  ;;  %1446 = vmatpush.msra.mxu3 %v1004_v41 }
 0x102   : > { %v2289_v52 = vsel %vm901_vm4, %v2199_v43, %v572_v5  ;;  %v2293_v19 = vsel %vm901_vm4, %v2134_v9, %v570_v14  ;;  %1076 = vmatpush.msra.mxu0 %v1003_v61  ;;  %1447 = vmatpush.msra.mxu1 %v1003_v61  ;;  %v657_v43 = vrot.slane %v2096_v32, 2 }
 0x103   : > { %1448 = vmatpush.msra.mxu2 %v1003_v61  ;;  %1449 = vmatpush.msra.mxu3 %v1003_v61 }
 0x104   : > { %v2322_v25 = vsel %vm464_vm1, %v657_v43, %v658_v7  ;;  %v347_v43 = vld [vmem:[%s2090_s23 + $0x10] sm:$0x3] }
 0x106   : > { %837 = vrot.lane.b32.xlu2 %v2040_v3, %s1671_s30 }
 0x107   : > { %790 = vrot.lane.b32.xlu1 %v2301_v22, %s1672_s5  ;;  %784 = vrot.lane.b32.xlu0 %v1949_v59, %s1672_s5 }
 0x108   : > { %v820_v9 = vpop.permute.xlu2 %819 }
 0x109   : > { %v578_v28 = vpop.permute.xlu1 %577  ;;  %v576_v12 = vpop.permute.xlu0 %575 }
 0x10a   : > { %v2313_v17 = vsel %vm901_vm4, %v2217_v20, %v578_v28  ;;  %v2317_v62 = vsel %vm901_vm4, %v2147_v53, %v576_v12  ;;  %v607_v12 = vrot.slane %v347_v43, 1 }
 0x10e   : > { %621 = vrot.lane.b32.xlu2 %v1880_v34, %s1670_s27 }
 0x10f   : > { %615 = vrot.lane.b32.xlu1 %v1844_v21, %s1670_s27  ;;  %843 = vrot.lane.b32.xlu0 %v2322_v25, %s1671_s30 }
 0x110   : > { %v671_v32 = vpop.permute.xlu2 %670 }
 0x111   : > { %v584_v20 = vpop.permute.xlu1 %583  ;;  %v582_v24 = vpop.permute.xlu0 %581 }
 0x112   : > { %v2332_v53 = vsel %vm901_vm4, %v2235_v1, %v584_v20  ;;  %v2336_v50 = vsel %vm901_vm4, %v2163_v51, %v582_v24 }
 0x116   : > { %629 = vrot.lane.b32.xlu2 %v1952_v60, %s1670_s27 }
 0x117   : > { %674 = vrot.lane.b32.xlu1 %v2027_v56, %s1669_s24  ;;  %668 = vrot.lane.b32.xlu0 %v2007_v42, %s1669_s24 }
 0x118   : > { %v721_v21 = vpop.permute.xlu2 %720 }
 0x119   : > { %v612_v34 = vpop.permute.xlu1 %611  ;;  %v610_v57 = vpop.permute.xlu0 %609 }
 0x11a   : > { %v919_v1 = vsel %vm918_vm6, %v2179_v27, %v610_v57 }
 0x11b   : > { %v936_v56 = vsel %vm935_vm7, %v919_v1, %v663_v30  ;;  %v906_v30 = vsel %vm901_vm4, %v2123_v29, %v2262_v40 }
 0x11e   : > { %724 = vrot.lane.b32.xlu2 %v1895_v39, %s1673_s6 }
 0x11f   : > { %718 = vrot.lane.b32.xlu1 %v1861_v26, %s1673_s6  ;;  %635 = vrot.lane.b32.xlu0 %v1970_v10, %s1670_s27 }
 0x120   : > { %v775_v60 = vpop.permute.xlu2 %774 }
 0x121   : > { %v767_v42 = vpop.permute.xlu1 %766  ;;  %v713_v51 = vpop.permute.xlu0 %712 }
 0x122   : > { %v953_v27 = vsel %vm952_vm8, %v936_v56, %v713_v51 }
 0x123   : > { %v970_v39 = vsel %vm969_vm9, %v953_v27, %v767_v42 }
 0x124   : > { %v987_v36 = vsel %vm986_vm10, %v970_v39, %v820_v9  ;;  %v348_v39 = vld [vmem:[%s2090_s23 + $0x18] sm:$0xff] }
 0x125   : > { %1399 = vmatmul.msk.f32.vlgmr.msra.gmra.mxu0 %vm1008_vm11, %v987_v36 }
 0x126   : > { %772 = vrot.lane.b32.xlu2 %v1883_v35, %s1672_s5 }
 0x127   : > { %688 = vrot.lane.b32.xlu1 %v2058_v11, %s1669_s24  ;;  %682 = vrot.lane.b32.xlu0 %v2043_v4, %s1669_s24 }
 0x128   : > { %v828_v26 = vpop.permute.xlu2 %827 }
 0x129   : > { %v665_v63 = vpop.permute.xlu1 %664  ;;  %v618_v5 = vpop.permute.xlu0 %617 }
 0x12a   : > { %v923_v14 = vsel %vm918_vm6, %v906_v30, %v618_v5 }
 0x12b   : > { %v940_v41 = vsel %vm935_vm7, %v923_v14, %v671_v32 }
 0x12c   : > { %v957_v35 = vsel %vm952_vm8, %v940_v41, %v721_v21 }
 0x12d   : > { %v974_v61 = vsel %vm969_vm9, %v957_v35, %v775_v60 }
 0x12e   : > { %738 = vrot.lane.b32.xlu2 %v2093_v31, %s1673_s6  ;;  %v991_v4 = vsel %vm986_vm10, %v974_v61, %v828_v26 }
 0x12f   : > { %732 = vrot.lane.b32.xlu1 %v1920_v48, %s1673_s6  ;;  %778 = vrot.lane.b32.xlu0 %v1914_v46, %s1672_s5  ;;  %v660_v48 = vrot.slane %v347_v43, 2 }
 0x130   : > { %1403 = vmatmul.msk.f32.vlgmr.msra.gmra.mxu1 %vm1008_vm11, %v991_v4  ;;  %v2378_v29 = vpop.permute.xlu2 %613 }
 0x131   : > { %v715_v40 = vpop.permute.xlu1 %714  ;;  %v626_v9 = vpop.permute.xlu0 %625  ;;  %v2390_v20 = vsel %vm464_vm1, %v658_v7, %v660_v48 }
 0x136   : > { %786 = vrot.lane.b32.xlu2 %v1946_v58, %s1672_s5  ;;  %v2395_v58 = vsel %vm375_vm0, %v605_v2, %v607_v12 }
 0x137   : > { %831 = vrot.lane.b32.xlu1 %v2021_v54, %s1671_s30  ;;  %825 = vrot.lane.b32.xlu0 %v2001_v33, %s1671_s30  ;;  %v920_v54 = vsel %vm918_vm6, %v2251_v23, %v612_v34 }
 0x138   : > { %v673_v28 = vpop.permute.xlu2 %672  ;;  %v937_v33 = vsel %vm935_vm7, %v920_v54, %v665_v63 }
 0x139   : > { %v769_v46 = vpop.permute.xlu1 %768  ;;  %v679_v32 = vpop.permute.xlu0 %678  ;;  %v954_v7 = vsel %vm952_vm8, %v937_v33, %v715_v40 }
 0x13a   : > { %v971_v2 = vsel %vm969_vm9, %v954_v7, %v769_v46 }
 0x13e   : > { %845 = vrot.lane.b32.xlu2 %v2390_v20, %s1671_s30 }
 0x13f   : > { %839 = vrot.lane.b32.xlu1 %v2061_v15, %s1671_s30  ;;  %792 = vrot.lane.b32.xlu0 %v2395_v58, %s1672_s5  ;;  %v927_v15 = vsel %vm918_vm6, %v2289_v52, %v626_v9  ;;  %v350_v9 = vld [vmem:[%s2090_s23 + $0x28] sm:$0x3] }
 0x140   : > { %v2407_v31 = vpop.permute.xlu2 %716  ;;  %v944_v34 = vsel %vm935_vm7, %v927_v15, %v679_v32  ;;  %v764_v48 = vrot.slane %v350_v9, 1 }
 0x141   : > { %v822_v24 = vpop.permute.xlu1 %821  ;;  %v729_v21 = vpop.permute.xlu0 %728 }
 0x142   : > { %v988_v23 = vsel %vm986_vm10, %v971_v2, %v822_v24  ;;  %v961_v1 = vsel %vm952_vm8, %v944_v34, %v729_v21 }
 0x143   : > { %1400 = vmatmul.msk.f32.gmra.mxu0 %vm1008_vm11, %v988_v23 }
 0x146   : > { %631 = vrot.lane.b32.xlu2 %v1949_v59, %s1670_s27 }
 0x147   : > { %676 = vrot.lane.b32.xlu1 %v2024_v55, %s1669_s24  ;;  %623 = vrot.lane.b32.xlu0 %v1917_v47, %s1670_s27 }
 0x148   : > { %v2421_v57 = vpop.permute.xlu2 %686 }
 0x149   : > { %v836_v60 = vpop.permute.xlu1 %835  ;;  %v783_v42 = vpop.permute.xlu0 %782 }
 0x14a   : > { %v978_v59 = vsel %vm969_vm9, %v961_v1, %v783_v42 }
 0x14b   : > { %v995_v52 = vsel %vm986_vm10, %v978_v59, %v836_v60 }
 0x14c   : > { %1407 = vmatmul.msk.f32.vlgmr.msra.gmra.mxu2 %vm1008_vm11, %v995_v52 }
 0x14e   : > { %684 = vrot.lane.b32.xlu2 %v2040_v3, %s1669_s24 }
 0x14f   : > { %726 = vrot.lane.b32.xlu1 %v1889_v37, %s1673_s6  ;;  %637 = vrot.lane.b32.xlu0 %v2301_v22, %s1670_s27  ;;  %v349_v37 = vld [vmem:[%s2090_s23 + $0x20] sm:$0xff]  ;;  %v814_v22 = vrot.slane %v348_v39, 2  ;;  %s2494_s23 = sand.u32 1, %s1640_s16  }
 0x150   : > { %v731_v47 = vpop.permute.xlu2 %730  ;;  %v762_v36 = vrot.slane %v349_v37, 1  ;;  %v815_v30 = vrot.slane %v349_v37, 2 }
 0x151   : > { %v667_v55 = vpop.permute.xlu1 %666  ;;  %v620_v56 = vpop.permute.xlu0 %619 }
 0x152   : > { %v816_v63 = vsel %vm464_vm1, %v814_v22, %v815_v30  ;;  %v765_v32 = vsel %vm375_vm0, %v762_v36, %v764_v48 }
 0x156   : > { %734 = vrot.lane.b32.xlu2 %v1923_v49, %s1673_s6  ;;  %v761_v49 = vrot.slane %v348_v39, 1 }
 0x157   : > { %780 = vrot.lane.b32.xlu1 %v1911_v45, %s1672_s5  ;;  %690 = vrot.lane.b32.xlu0 %v2322_v25, %s1669_s24 }
 0x158   : > { %v830_v51 = vpop.permute.xlu2 %829  ;;  %v763_v5 = vsel %vm375_vm0, %v761_v49, %v762_v36 }
 0x159   : > { %v634_v3 = vpop.permute.xlu1 %633  ;;  %v628_v27 = vpop.permute.xlu0 %627 }
 0x15a   : > { %v931_v23 = vsel %vm918_vm6, %v2244_v8, %v634_v3 }
 0x15e   : > { %788 = vrot.lane.b32.xlu2 %v1970_v10, %s1672_s5  ;;  %v924_v10 = vsel %vm918_vm6, %v2265_v18, %v620_v56  ;;  %v921_v18 = vsel %vm918_vm6, %v2247_v38, %v2378_v29 }
 0x15f   : > { %833 = vrot.lane.b32.xlu1 %v2046_v6, %s1671_s30  ;;  %740 = vrot.lane.b32.xlu0 %v348_v39, %s1673_s6  ;;  %v941_v6 = vsel %vm935_vm7, %v924_v10, %v673_v28  ;;  %v817_v28 = vrot.slane %v350_v9, 2 }
 0x160   : > { %v838_v25 = vpop.permute.xlu2 %837 }
 0x161   : > { %v681_v45 = vpop.permute.xlu1 %680  ;;  %v723_v26 = vpop.permute.xlu0 %722 }
 0x162   : > { %v958_v14 = vsel %vm952_vm8, %v941_v6, %v723_v26 }
 0x166   : > { %847 = vrot.lane.b32.xlu2 %v816_v63, %s1671_s30 }
 0x167   : > { %841 = vrot.lane.b32.xlu1 %v2058_v11, %s1671_s30  ;;  %794 = vrot.lane.b32.xlu0 %v763_v5, %s1672_s5  ;;  %v938_v11 = vsel %vm935_vm7, %v921_v18, %v667_v55 }
 0x168   : > { %v622_v40 = vpop.permute.xlu2 %621  ;;  %v955_v43 = vsel %vm952_vm8, %v938_v11, %v2407_v31 }
 0x169   : > { %v777_v41 = vpop.permute.xlu1 %776  ;;  %v771_v35 = vpop.permute.xlu0 %770  ;;  %v925_v49 = vsel %vm918_vm6, %v2213_v44, %v622_v40 }
 0x16a   : > { %v975_v61 = vsel %vm969_vm9, %v958_v14, %v777_v41  ;;  %v972_v38 = vsel %vm969_vm9, %v955_v43, %v771_v35 }
 0x16b   : > { %v992_v4 = vsel %vm986_vm10, %v975_v61, %v830_v51 }
 0x16c   : > { %1404 = vmatmul.msk.f32.gmra.mxu1 %vm1008_vm11, %v992_v4 }
 0x16e   : > { %742 = vrot.lane.b32.xlu2 %v349_v37, %s1673_s6 }
 0x16f   : > { %639 = vrot.lane.b32.xlu0 %v2395_v58, %s1670_s27  ;;  %692 = vrot.lane.b32.xlu1 %v2390_v20, %s1669_s24  ;;  %v818_v58 = vsel %vm464_vm1, %v815_v30, %v817_v28  ;;  %v928_v20 = vsel %vm918_vm6, %v2231_v0, %v628_v27  ;;  %v948_v0 = vsel %vm935_vm7, %v931_v23, %v2421_v57  ;;  %s1391_s24 = sshll.u32 %s2494_s23, 7 }
 0x170   : > { %v945_v54 = vsel %vm935_vm7, %v928_v20, %v681_v45  ;;  %v630_v33 = vpop.permute.xlu2 %629  ;;  %s2497_s27 = scalar_lea.vmem [#allocation2], %s1391_s24  ;;  %s1421_s24 = sshll.u32 %s1652_s19, 1 }
 0x171   : > { %v824_v29 = vpop.permute.xlu1 %823  ;;  %v737_v12 = vpop.permute.xlu0 %736  ;;  %v962_v31 = vsel %vm952_vm8, %v945_v54, %v731_v47  ;;  %v929_v41 = vsel %vm918_vm6, %v2317_v62, %v630_v33  ;;  %s1224_s11 = sshll.u32 %s2497_s27, 4  ;;  %s1225_s11 = int_to_ptr.vmem [resolvable:$true] %s1224_s11 }
 0x172   : > { %v989_v46 = vsel %vm986_vm10, %v972_v38, %v824_v29  ;;  %v965_v15 = vsel %vm952_vm8, %v948_v0, %v737_v12 }
 0x173   : > { %1401 = vmatmul.msk.f32.gmra.mxu0 %vm1008_vm11, %v989_v46 }
 0x177   : > { %796 = vrot.lane.b32.xlu0 %v765_v32, %s1672_s5  ;;  %849 = vrot.lane.b32.xlu1 %v818_v58, %s1671_s30  ;;  %s1432_s30 = sshll.u32 %s1648_s18, 4  ;;  %s1419_s5 = sshll.u32 %s1652_s19, 5 }
 0x178   : > { %v725_v34 = vpop.permute.xlu2 %724  ;;  %s1221_s6 = sadd.s32 %s1432_s30, %s1419_s5  ;;  %s1204_s30 = scalar_lea.sflag [#allocation3], %s2494_s23 }
 0x179   : > { %v791_v7 = vpop.permute.xlu1 %790  ;;  %v785_v2 = vpop.permute.xlu0 %784  ;;  %s1420_s13 = sshll.u32 %s1221_s6, 3 }
 0x17a   : > { %v979_v24 = vsel %vm969_vm9, %v962_v31, %v785_v2  ;;  %v982_v1 = vsel %vm969_vm9, %v965_v15, %v791_v7  ;;  %s1223_s10 = scalar_lea.hbm %s2649_s3, %s1420_s13 }
 0x17b   : > { %v996_v21 = vsel %vm986_vm10, %v979_v24, %v838_v25  ;;  %s1226_s12 = sshll.u32 %s1223_s10, 4  ;;  %s1227_s12 = int_to_ptr.hbm [resolvable:$true] %s1226_s12 }
 0x17c   : > { %1408 = vmatmul.msk.f32.gmra.mxu2 %vm1008_vm11, %v996_v21  ;;  %s1552_s5 = sshra.s32 %s1227_s12, 4  ;;  %s1553_s5 = int_to_ptr.hbm [resolvable:$true] %s1552_s5 }
 0x17d   : > { %s1554_s6 = scalar_lea.hbm %s1553_s5, 128  ;;  %p1559_p5 = scmp.lt.s32.totalorder %s1553_s5, %s2649_s3 }
 0x17e   : > { %p1555_p1 = scmp.ne.s32.totalorder %s1553_s5, %s1554_s6  ;;  %p1560_p6 = scmp.lt.s32.totalorder %s1558_s8, %s1554_s6 }
 0x180   : > { %v773_v8 = vpop.permute.xlu2 %772  ;;  %p1556_p2 = pnand %p1555_p1, %p1751_p3  ;;  %p1561_p7 = por %p1560_p6, %p1559_p5 }
 0x181   : > { %v616_v60 = vpop.permute.xlu1 %615  ;;  %v844_v42 = vpop.permute.xlu0 %843 }
 0x182   : > { %v999_v59 = vsel %vm986_vm10, %v982_v1, %v844_v42  ;;  %v922_v36 = vsel %vm918_vm6, %v2195_v16, %v616_v60  ;;  %p1557_p4 = pneg %p1556_p2 }
 0x183   : > { %1411 = vmatmul.msk.f32.vlgmr.msra.gmra.mxu3 %vm1008_vm11, %v999_v59 }
 0x184   : > { %p1562_p9 = pnand %p1561_p7, %p1557_p4 }
 0x188   : > { %v739_v51 = vpop.permute.xlu2 %738 }
 0x189   : > { %v675_v52 = vpop.permute.xlu1 %674  ;;  %v669_v47 = vpop.permute.xlu0 %668 }
 0x18a   : > { %v942_v45 = vsel %vm935_vm7, %v925_v49, %v675_v52  ;;  %v939_v26 = vsel %vm935_vm7, %v922_v36, %v669_v47 }
 0x18b   : > { %v959_v63 = vsel %vm952_vm8, %v942_v45, %v725_v34 }
 0x190   : > { %v787_v27 = vpop.permute.xlu2 %786 }
 0x191   : > { %v719_v55 = vpop.permute.xlu1 %718  ;;  %v636_v56 = vpop.permute.xlu0 %635 }
 0x192   : > { %v956_v30 = vsel %vm952_vm8, %v939_v26, %v719_v55  ;;  %v932_v35 = vsel %vm918_vm6, %v2336_v50, %v636_v56 }
 0x193   : > { %v973_v14 = vsel %vm969_vm9, %v956_v30, %v773_v8 }
 0x198   : > { %v846_v25 = vpop.permute.xlu2 %845 }
 0x199   : > { %v689_v3 = vpop.permute.xlu1 %688  ;;  %v683_v57 = vpop.permute.xlu0 %682 }
 0x19a   : > { %v946_v61 = vsel %vm935_vm7, %v929_v41, %v683_v57  ;;  %v949_v18 = vsel %vm935_vm7, %v932_v35, %v689_v3 }
 0x19b   : > { %v966_v9 = vsel %vm952_vm8, %v949_v18, %v739_v51 }
 0x1a0   : > { %v632_v48 = vpop.permute.xlu2 %631 }
 0x1a1   : > { %v733_v39 = vpop.permute.xlu1 %732  ;;  %v779_v37 = vpop.permute.xlu0 %778 }
 0x1a2   : > { %v1078_v22 = vpop.f32.mrf.mxu0  ;;  %v976_v5 = vsel %vm969_vm9, %v959_v63, %v779_v37  ;;  %v963_v40 = vsel %vm952_vm8, %v946_v61, %v733_v39 }
 0x1a3   : > { %1126 = vst [vmem:[%s2497_s27] sm:$0xff] %v1078_v22  ;;  %v980_v62 = vsel %vm969_vm9, %v963_v40, %v787_v27  ;;  %v1163_v58 = vmul.f32 %v1078_v22, %v1078_v22 }
 0x1a8   : > { %v685_v46 = vpop.permute.xlu2 %684 }
 0x1a9   : > { %v832_v10 = vpop.permute.xlu1 %831  ;;  %v826_v6 = vpop.permute.xlu0 %825 }
 0x1aa   : > { %v990_v44 = vsel %vm986_vm10, %v973_v14, %v826_v6  ;;  %v993_v16 = vsel %vm986_vm10, %v976_v5, %v832_v10 }
 0x1ab   : > { %1402 = vmatmul.msk.f32.gmra.mxu0 %vm1008_vm11, %v990_v44  ;;  %1405 = vmatmul.msk.f32.gmra.mxu1 %vm1008_vm11, %v993_v16 }
 0x1ad   : > { %v2519_v4 = vpop.f32.mrf.mxu1 }
 0x1ae   : > { %1130 = vst [vmem:[%s2497_s27 + $0x20] sm:$0xff] %v2519_v4 }
 0x1b0   : > { %v735_v2 = vpop.permute.xlu2 %734 }
 0x1b1   : > { %v840_v11 = vpop.permute.xlu1 %839  ;;  %v793_v43 = vpop.permute.xlu0 %792 }
 0x1b2   : > { %v983_v50 = vsel %vm969_vm9, %v966_v9, %v793_v43  ;;  %v997_v28 = vsel %vm986_vm10, %v980_v62, %v840_v11 }
 0x1b3   : > { %1409 = vmatmul.msk.f32.gmra.mxu2 %vm1008_vm11, %v997_v28  ;;  %v1000_v38 = vsel %vm986_vm10, %v983_v50, %v846_v25 }
 0x1b4   : > { %1412 = vmatmul.msk.f32.gmra.mxu3 %vm1008_vm11, %v1000_v38 }
 0x1b8   : > { %v789_v34 = vpop.permute.xlu2 %788 }
 0x1b9   : > { %v677_v29 = vpop.permute.xlu1 %676  ;;  %v624_v12 = vpop.permute.xlu0 %623 }
 0x1ba   : > { %v926_v23 = vsel %vm918_vm6, %v2293_v19, %v624_v12  ;;  %v930_v19 = vsel %vm918_vm6, %v2313_v17, %v632_v48  ;;  %v1167_v48 = vmul.f32 %v2519_v4, %v2519_v4 }
 0x1bb   : > { %v943_v0 = vsel %vm935_vm7, %v926_v23, %v677_v29  ;;  %v947_v47 = vsel %vm935_vm7, %v930_v19, %v685_v46 }
 0x1bc   : > { %v964_v55 = vsel %vm952_vm8, %v947_v47, %v735_v2 }
 0x1bd   : > { %v981_v3 = vsel %vm969_vm9, %v964_v55, %v789_v34 }
 0x1c0   : > { %v1081_v32 = vpop.f32.mrf.mxu0  ;;  %v848_v51 = vpop.permute.xlu2 %847 }
 0x1c1   : > { %1127 = vst [vmem:[%s2497_s27 + $0x8] sm:$0xff] %v1081_v32  ;;  %v1142_v20 = vadd.f32 %v1081_v32, %v1078_v22  ;;  %v1164_v54 = vmul.f32 %v1081_v32, %v1081_v32  ;;  %v727_v33 = vpop.permute.xlu1 %726  ;;  %v638_v7 = vpop.permute.xlu0 %637 }
 0x1c2   : > { %v960_v1 = vsel %vm952_vm8, %v943_v0, %v727_v33  ;;  %v933_v8 = vsel %vm918_vm6, %v2332_v53, %v638_v7 }
 0x1c3   : > { %v1179_v31 = vadd.f32 %v1164_v54, %v1163_v58 }
 0x1c8   : > { %v743_v26 = vpop.permute.xlu2 %742 }
 0x1c9   : > { %v781_v24 = vpop.permute.xlu1 %780  ;;  %v691_v21 = vpop.permute.xlu0 %690 }
 0x1ca   : > { %v977_v60 = vsel %vm969_vm9, %v960_v1, %v781_v24  ;;  %v950_v56 = vsel %vm935_vm7, %v933_v8, %v691_v21 }
 0x1cf   : > { %v2536_v15 = vpop.f32.mrf.mxu2 }
 0x1d0   : > { %1134 = vst [vmem:[%s2497_s27 + $0x40] sm:$0xff] %v2536_v15 }
 0x1d1   : > { %v834_v42 = vpop.permute.xlu1 %833  ;;  %v741_v59 = vpop.permute.xlu0 %740 }
 0x1d2   : > { %v994_v52 = vsel %vm986_vm10, %v977_v60, %v834_v42  ;;  %v967_v57 = vsel %vm952_vm8, %v950_v56, %v741_v59 }
 0x1d3   : > { %1406 = vmatmul.msk.f32.gmra.mxu1 %vm1008_vm11, %v994_v52 }
 0x1d9   : > { %v842_v27 = vpop.permute.xlu1 %841  ;;  %v795_v39 = vpop.permute.xlu0 %794 }
 0x1da   : > { %v984_v37 = vsel %vm969_vm9, %v967_v57, %v795_v39  ;;  %v998_v17 = vsel %vm986_vm10, %v981_v3, %v842_v27 }
 0x1db   : > { %1410 = vmatmul.msk.f32.gmra.mxu2 %vm1008_vm11, %v998_v17  ;;  %v1001_v53 = vsel %vm986_vm10, %v984_v37, %v848_v51 }
 0x1dc   : > { %1413 = vmatmul.msk.f32.gmra.mxu3 %vm1008_vm11, %v1001_v53 }
 0x1e1   : > { %v640_v22 = vpop.permute.xlu0 %639  ;;  %v693_v49 = vpop.permute.xlu1 %692 }
 0x1e2   : > { %v934_v36 = vsel %vm918_vm6, %v2260_v13, %v640_v22 }
 0x1e3   : > { %v951_v45 = vsel %vm935_vm7, %v934_v36, %v693_v49 }
 0x1e4   : > { %v968_v30 = vsel %vm952_vm8, %v951_v45, %v743_v26 }
 0x1e9   : > { %v1093_v25 = vpop.f32.mrf.mxu1  ;;  %v797_v63 = vpop.permute.xlu0 %796 }
 0x1ea   : > { %1131 = vst [vmem:[%s2497_s27 + $0x28] sm:$0xff] %v1093_v25  ;;  %v985_v5 = vsel %vm969_vm9, %v968_v30, %v797_v63  ;;  %v850_v10 = vpop.permute.xlu1 %849  ;;  %v1168_v38 = vmul.f32 %v1093_v25, %v1093_v25 }
 0x1eb   : > { %v1002_v6 = vsel %vm986_vm10, %v985_v5, %v850_v10 }
 0x1ec   : > { %1414 = vmatmul.msk.f32.gmra.mxu3 %vm1008_vm11, %v1002_v6 }
 0x1f0   : > { %v1084_v13 = vpop.f32.mrf.mxu0 }
 0x1f1   : > { %1128 = vst [vmem:[%s2497_s27 + $0x10] sm:$0xff] %v1084_v13  ;;  %v1143_v14 = vadd.f32 %v1142_v20, %v1084_v13  ;;  %v1165_v44 = vmul.f32 %v1084_v13, %v1084_v13 }
 0x1f3   : > { %v1180_v16 = vadd.f32 %v1179_v31, %v1165_v44  ;;  %v1171_v31 = vmul.f32 %v2536_v15, %v2536_v15 }
 0x1ff   : > { %v1105_v41 = vpop.f32.mrf.mxu2 }
 0x200   : > { %1135 = vst [vmem:[%s2497_s27 + $0x48] sm:$0xff] %v1105_v41  ;;  %v1172_v24 = vmul.f32 %v1105_v41, %v1105_v41 }
 0x206   : > { %v1114_v35 = vpop.f32.mrf.mxu3 }
 0x207   : > { %1138 = vst [vmem:[%s2497_s27 + $0x60] sm:$0xff] %v1114_v35 }
 0x228   : > { %v1087_v61 = vpop.f32.mrf.mxu0  ;;  %v1096_v18 = vpop.f32.mrf.mxu1 }
 0x229   : > { %1129 = vst [vmem:[%s2497_s27 + $0x18] sm:$0xff] %v1087_v61  ;;  %v1166_v9 = vmul.f32 %v1087_v61, %v1087_v61  ;;  %v1144_v43 = vadd.f32 %v1143_v14, %v1087_v61  ;;  %v1169_v58 = vmul.f32 %v1096_v18, %v1096_v18 }
 0x22a   : > { %1132 = vst [vmem:[%s2497_s27 + $0x30] sm:$0xff] %v1096_v18 }
 0x22b   : > { %v1181_v62 = vadd.f32 %v1180_v16, %v1166_v9  ;;  %v1145_v50 = vadd.f32 %v1144_v43, %v2519_v4 }
 0x22d   : > { %v1182_v28 = vadd.f32 %v1181_v62, %v1167_v48  ;;  %v1146_v29 = vadd.f32 %v1145_v50, %v1093_v25 }
 0x22f   : > { %v1183_v12 = vadd.f32 %v1182_v28, %v1168_v38  ;;  %v1147_v32 = vadd.f32 %v1146_v29, %v1096_v18 }
 0x231   : > { %v1184_v54 = vadd.f32 %v1183_v12, %v1169_v58 }
 0x236   : > { %v1108_v40 = vpop.f32.mrf.mxu2 }
 0x237   : > { %1136 = vst [vmem:[%s2497_s27 + $0x50] sm:$0xff] %v1108_v40  ;;  %v1117_v11 = vpop.f32.mrf.mxu3  ;;  %v1173_v1 = vmul.f32 %v1108_v40, %v1108_v40 }
 0x238   : > { %1139 = vst [vmem:[%s2497_s27 + $0x68] sm:$0xff] %v1117_v11  ;;  %v1176_v55 = vmul.f32 %v1117_v11, %v1117_v11 }
 0x250   : > { %v1099_v46 = vpop.f32.mrf.mxu1 }
 0x251   : > { %1133 = vst [vmem:[%s2497_s27 + $0x38] sm:$0xff] %v1099_v46  ;;  %v1170_v20 = vmul.f32 %v1099_v46, %v1099_v46  ;;  %v1148_v33 = vadd.f32 %v1147_v32, %v1099_v46 }
 0x253   : > { %v1185_v7 = vadd.f32 %v1184_v54, %v1170_v20  ;;  %v1149_v4 = vadd.f32 %v1148_v33, %v2536_v15  ;;  %v1175_v15 = vmul.f32 %v1114_v35, %v1114_v35 }
 0x255   : > { %v1186_v2 = vadd.f32 %v1185_v7, %v1171_v31  ;;  %v1150_v21 = vadd.f32 %v1149_v4, %v1105_v41 }
 0x257   : > { %v1187_v0 = vadd.f32 %v1186_v2, %v1172_v24  ;;  %v1151_v60 = vadd.f32 %v1150_v21, %v1108_v40 }
 0x259   : > { %v1188_v52 = vadd.f32 %v1187_v0, %v1173_v1 }
 0x25e   : > { %v1111_v23 = vpop.f32.mrf.mxu2 }
 0x25f   : > { %1137 = vst [vmem:[%s2497_s27 + $0x58] sm:$0xff] %v1111_v23  ;;  %v1120_v34 = vpop.f32.mrf.mxu3  ;;  %v1174_v42 = vmul.f32 %v1111_v23, %v1111_v23  ;;  %v1152_v59 = vadd.f32 %v1151_v60, %v1111_v23 }
 0x260   : > { %1140 = vst [vmem:[%s2497_s27 + $0x70] sm:$0xff] %v1120_v34  ;;  %v1177_v57 = vmul.f32 %v1120_v34, %v1120_v34 }
 0x261   : > { %v1189_v19 = vadd.f32 %v1188_v52, %v1174_v42  ;;  %v1153_v47 = vadd.f32 %v1152_v59, %v1114_v35 }
 0x263   : > { %v1190_v8 = vadd.f32 %v1189_v19, %v1175_v15  ;;  %v1154_v56 = vadd.f32 %v1153_v47, %v1117_v11 }
 0x265   : > { %v1191_v51 = vadd.f32 %v1190_v8, %v1176_v55  ;;  %v1155_v3 = vadd.f32 %v1154_v56, %v1120_v34 }
 0x267   : > { %v1192_v39 = vadd.f32 %v1191_v51, %v1177_v57 }
 0x26f   : > { %v1123_v27 = vpop.f32.mrf.mxu3 }
 0x270   : > { %1141 = vst [vmem:[%s2497_s27 + $0x78] sm:$0xff] %v1123_v27  ;;  %v1156_v37 = vadd.f32 %v1155_v3, %v1123_v27  ;;  %v1178_v17 = vmul.f32 %v1123_v27, %v1123_v27 }
 0x271   : > { %1565 = shalt.err (!%p1562_p9)
}
 0x272   : > { %s1674_s19 = smov 128   ;;  %s2657_s27 = smov 8   ;;  %v1157_v53 = vrot.slane %v1156_v37, 4  ;;  %v1193_v22 = vadd.f32 %v1192_v39, %v1178_v17  ;;  %vm1200_vm12 = vcmask 1040384  }
 0x273   : > { %1453 = dma.vmem_to_hbm [thread:$0]  (%p1751_p3), %s1225_s11, 2048, %s1227_s12, %s1204_s30, %s1674_s19, %s1674_s19, %s2657_s27  }
 0x274   : > { %s1239_s0 = sadd.s32 %s1648_s18, %s1421_s24  ;;  %v1158_v49 = vadd.f32 %v1157_v53, %v1156_v37  ;;  %v1194_v36 = vrot.slane %v1193_v22, 4  ;;  %s1392_s9 = sshll.u32 %s2494_s23, 1 }
 0x275   : > { %s1422_s5 = sshll.u32 %s1239_s0, 1  ;;  %s283_s11 = scalar_lea.vmem [#allocation4], %s1392_s9 }
 0x276   : > { %v1159_v45 = vrot.slane %v1158_v49, 2  ;;  %v1195_v26 = vadd.f32 %v1194_v36, %v1193_v22  ;;  %s1241_s14 = scalar_lea.hbm %s2650_s4, %s1422_s5  ;;  %s1243_s12 = sshll.u32 %s283_s11, 4  ;;  %s1244_s12 = int_to_ptr.vmem [resolvable:$true] %s1243_s12 }
 0x277   : > { %s1245_s18 = sshll.u32 %s1241_s14, 4  ;;  %s1209_s0 = scalar_lea.sflag [#allocation5], %s2494_s23  ;;  %s1246_s18 = int_to_ptr.hbm [resolvable:$true] %s1245_s18 }
 0x278   : > { %v1160_v30 = vadd.f32 %v1159_v45, %v1158_v49  ;;  %v1196_v25 = vrot.slane %v1195_v26, 2  ;;  %s1580_s24 = sshra.s32 %s1246_s18, 4  ;;  %s1586_s19 = scalar_lea.hbm %s2650_s4, 8  ;;  %s1581_s24 = int_to_ptr.hbm [resolvable:$true] %s1580_s24 }
 0x279   : > { %s1582_s30 = scalar_lea.hbm %s1581_s24, 2  ;;  %p1587_p13 = scmp.lt.s32.totalorder %s1581_s24, %s2650_s4 }
 0x27a   : > { %v1161_v63 = vrot.slane %v1160_v30, 1  ;;  %v1197_v5 = vadd.f32 %v1196_v25, %v1195_v26  ;;  %p1583_p10 = scmp.ne.s32.totalorder %s1581_s24, %s1582_s30  ;;  %p1588_p0 = scmp.lt.s32.totalorder %s1586_s19, %s1582_s30 }
 0x27c   : > { %v1198_v10 = vrot.slane %v1197_v5, 1  ;;  %v1162_v6 = vadd.f32 %v1161_v63, %v1160_v30  ;;  %p1584_p11 = pnand %p1583_p10, %p1751_p3  ;;  %p1589_p1 = por %p1588_p0, %p1587_p13 }
 0x27e   : > { %v1199_v13 = vadd.f32 %v1198_v10, %v1197_v5  ;;  %p1585_p12 = pneg %p1584_p11 }
 0x280   : > { %v1201_v14 = vsel %vm1200_vm12, %v1162_v6, %v1199_v13  ;;  %p1590_p2 = pnand %p1589_p1, %p1585_p12 }
 0x281   : > { %1202 = vst [vmem:[%s283_s11] sm:$0x3] %v1201_v14 }
 0x282   : > { %1593 = shalt.err (!%p1590_p2)
}
 0x283   : > { %1454 = dma.vmem_to_hbm [thread:$0]  (%p1751_p3), %s1244_s12, 32, %s1246_s18, %s1209_s0  }
 0x284 PF: > { %p1464_p4 = scmp.ge.s32.totalorder %s1664_s22, 2  ;;  %s1257_s23 = sand.u32 1, %s1636_s15  }
 0x285   : > { %s1258_s5 = scalar_lea.sflag [#allocation3], %s1257_s23 }
 0x286   : > { %p1458_p5 = pnand %p1464_p4, %p1760_p8 }
 0x288   : > { %p1459_p6 = pneg %p1458_p5 }
 0x28a   : > { %1627 = dma.done.wait (%p1459_p6), %s1258_s5, 2048  }
 0x28b   : > { %1629 = vsyncadd (%p1459_p6), %s1258_s5, 4294965248  ;;  %s1268_s6 = scalar_lea.sflag [#allocation5], %s1257_s23 }
 0x28c   : > { %1631 = dma.done.wait (%p1459_p6), %s1268_s6, 32  }
 0x28d   : > { %1633 = vsyncadd (%p1459_p6), %s1268_s6, 4294967264  ;;  %s21_s22 = sadd.s32 1, %s1664_s22   ;;  %s2658_s15 = smov %s1640_s16 }
 0x28e   : > { %p18_p7 = scmp.ge.s32.totalorder %s21_s22, 6   ;;  %s2659_s16 = smov %s1644_s17 }
 0x28f   : > { %s2660_s17 = smov %s1769_s7  ;;  %s2661_s18 = smov %s1656_s20 }
 0x290   : > { %s2662_s19 = smov %s1660_s21  ;;  %s2663_s20 = smov %s2666_s25 }
 0x291   : > { %s2664_s21 = smov %s2670_s26  ;;  %20 = sbr.rel (!%p18_p7) target bundleno = 9 (0x9), region = 87 }
 0x296   :  { %1274 = vsyncpa [#allocation3], 1 }
 0x297   :  { %1276 = vsyncpa [#allocation3 + $0x1], 1 }
 0x298   :  { %1277 = vsyncpa [#allocation5], 1 }
 0x299   :  { %1279 = vsyncpa [#allocation5 + $0x1], 1 }

</bundles_post_ra>
